<compile_context>
chip_gen: v6e
topology: v6e:2x2x1
jax: 0.10.0
libtpu: 0.0.40
codegen_flags: <defaults>
</compile_context>

<pallas_src>
import jax
import jax.numpy as jnp
from jax.experimental import pallas as pl
from jax.experimental.pallas import tpu as pltpu

K_IN = 100          # input features (contraction dim of first matmul)
H_REAL = 200        # logical hidden features (LayerNorm extent)
H_PAD = 256         # padded hidden dim (full 256-wide MXU / lane-dense VPU)
N_OUT = 784         # logical output features (written directly, no slice)


def _round_up(x, m):
    return ((x + m - 1) // m) * m


def generator_kernel(x_ref, w1_ref, b1_ref, gamma_ref, beta_ref,
                     w2_ref, b2_ref, out_ref):
    # ---- Linear(100 -> 200 [padded 256]), bf16 operands, f32 accumulate ----
    x = x_ref[...].astype(jnp.bfloat16)                       # (TB, 100)
    h = jnp.dot(x, w1_ref[...], preferred_element_type=jnp.float32)
    h = h + b1_ref[...]                                        # (TB, 256) f32
    # padded lanes 200..255 are exactly 0 (zero w1 cols, zero b1 pad)

    # ---- LeakyReLU(0.02) (VPU, f32) ----
    h = jnp.where(h >= 0.0, h, 0.02 * h)                       # 0 stays 0

    # ---- LayerNorm over the 200 real features, eps=1e-5 ----
    inv_n = 1.0 / float(H_REAL)
    mean = jnp.sum(h, axis=-1, keepdims=True) * inv_n          # pad lanes = 0
    var = jnp.sum(h * h, axis=-1, keepdims=True) * inv_n - mean * mean
    inv_std = jax.lax.rsqrt(var + 1e-5)
    # gamma/beta are zero on padded lanes -> padded lanes stay exactly 0
    h = (h - mean) * inv_std * gamma_ref[...] + beta_ref[...]  # (TB, 256)

    # ---- Linear(200 [padded 256] -> 784), bf16 operands, f32 accumulate ----
    y = jnp.dot(h.astype(jnp.bfloat16), w2_ref[...],
                preferred_element_type=jnp.float32)
    y = y + b2_ref[...]                                        # (TB, 784)

    # ---- Sigmoid (EUP) + single store of the logical output ----
    out_ref[...] = jax.nn.sigmoid(y).astype(out_ref.dtype)


def generator_forward(x, w1, b1, gamma, beta, w2, b2, *,
                      block_b=512, out_dtype=jnp.float32):
    """x: (B, 100) f32. Pre-padded params: w1 (100, 256) bf16,
    b1/gamma/beta (1, 256) f32 (zero on lanes 200..255),
    w2 (256, 784) bf16 (zero rows 200..255), b2 (1, 784) f32."""
    B = x.shape[0]

    # Batch tile: big enough to amortize the ~0.35 us per-grid-step overhead,
    # but split so the grid has >= 2 steps whenever B >= 16 (keeps both v7x
    # TensorCores busy under dimension_semantics=("parallel",)).
    TB = max(8, min(block_b, _round_up(pl.cdiv(B, 2), 8)))
    B_pad = _round_up(B, TB)
    if B_pad != B:
        x = jnp.pad(x, ((0, B_pad - B), (0, 0)))   # rows only, often a no-op

    grid = (B_pad // TB,)

    out_itemsize = jnp.dtype(out_dtype).itemsize
    cost = pl.CostEstimate(
        flops=2 * B_pad * (K_IN * H_PAD + H_PAD * N_OUT),
        transcendentals=B_pad * (N_OUT + 1),          # sigmoid + rsqrt per row
        bytes_accessed=(B_pad * K_IN * 4
                        + w1.size * 2 + w2.size * 2
                        + (b1.size + gamma.size + beta.size + b2.size) * 4
                        + B_pad * N_OUT * out_itemsize),
    )

    out = pl.pallas_call(
        generator_kernel,
        out_shape=jax.ShapeDtypeStruct((B_pad, N_OUT), out_dtype),
        grid_spec=pltpu.PrefetchScalarGridSpec(
            num_scalar_prefetch=0,
            grid=grid,
            in_specs=[
                pl.BlockSpec((TB, K_IN),      lambda i: (i, 0)),  # x tile
                pl.BlockSpec((K_IN, H_PAD),   lambda i: (0, 0)),  # w1 (resident)
                pl.BlockSpec((1, H_PAD),      lambda i: (0, 0)),  # b1
                pl.BlockSpec((1, H_PAD),      lambda i: (0, 0)),  # gamma
                pl.BlockSpec((1, H_PAD),      lambda i: (0, 0)),  # beta
                pl.BlockSpec((H_PAD, N_OUT),  lambda i: (0, 0)),  # w2 (resident)
                pl.BlockSpec((1, N_OUT),      lambda i: (0, 0)),  # b2
            ],
            out_specs=pl.BlockSpec((TB, N_OUT), lambda i: (i, 0)),
        ),
        compiler_params=pltpu.CompilerParams(
            dimension_semantics=("parallel",),
            vmem_limit_bytes=32 * 1024 * 1024),
        cost_estimate=cost,
    )(x, w1, b1, gamma, beta, w2, b2)

    # Only trim padded rows (no column slice; width is already 784).
    if B_pad != B:
        out = out[:B]
    return out


def init_params(key):
    """Parameters mirroring nn.Linear(100,200), nn.LayerNorm(200),
    nn.Linear(200,784); matmul weights stored bf16, hidden dim pre-padded
    200 -> 256 with zeros, output dim kept at the logical 784."""
    k1, k2, k3, k4 = jax.random.split(key, 4)

    bound1 = 1.0 / jnp.sqrt(100.0)
    w1_f32 = jax.random.uniform(k1, (K_IN, H_REAL), jnp.float32, -bound1, bound1)
    b1_f32 = jax.random.uniform(k2, (1, H_REAL), jnp.float32, -bound1, bound1)

    bound2 = 1.0 / jnp.sqrt(200.0)
    w2_f32 = jax.random.uniform(k3, (H_REAL, N_OUT), jnp.float32, -bound2, bound2)
    b2 = jax.random.uniform(k4, (1, N_OUT), jnp.float32, -bound2, bound2)

    hp = H_PAD - H_REAL
    w1 = jnp.pad(w1_f32, ((0, 0), (0, hp))).astype(jnp.bfloat16)   # (100, 256)
    b1 = jnp.pad(b1_f32, ((0, 0), (0, hp)))                        # (1, 256)
    gamma = jnp.pad(jnp.ones((1, H_REAL), jnp.float32), ((0, 0), (0, hp)))
    beta = jnp.zeros((1, H_PAD), jnp.float32)
    w2 = jnp.pad(w2_f32, ((0, hp), (0, 0))).astype(jnp.bfloat16)   # (256, 784)

    return w1, b1, gamma, beta, w2, b2


if __name__ == "__main__":
    key = jax.random.PRNGKey(0)
    kx, kp = jax.random.split(key)

    B = 8
    x = jax.random.normal(kx, (B, K_IN), jnp.float32)
    w1, b1, gamma, beta, w2, b2 = init_params(kp)

    out = generator_forward(x, w1, b1, gamma, beta, w2, b2)
    out = jax.block_until_ready(out)
    assert out.shape == (B, N_OUT)

    # Reference using the same bf16 matmul operands / f32 accumulation and the
    # same padded-hidden LayerNorm formulation.
    h = jnp.dot(x.astype(jnp.bfloat16), w1,
                preferred_element_type=jnp.float32) + b1
    h = jnp.where(h >= 0.0, h, 0.02 * h)
    mean = jnp.sum(h, axis=-1, keepdims=True) / float(H_REAL)
    var = jnp.sum(h * h, axis=-1, keepdims=True) / float(H_REAL) - mean * mean
    h = (h - mean) * jax.lax.rsqrt(var + 1e-5) * gamma + beta
    y = jnp.dot(h.astype(jnp.bfloat16), w2,
                preferred_element_type=jnp.float32) + b2
    ref = jax.nn.sigmoid(y)

    assert jnp.allclose(out, ref, atol=2e-4, rtol=2e-4), (
        float(jnp.max(jnp.abs(out - ref))))
    print("KERNEL_OK")
</pallas_src>

<mosaic_0001>
module attributes {stable_mosaic.version = 11 : i64} {
  func.func @generator_kernel(%arg0: i32, %arg1: memref<8x100xf32, #tpu.memory_space<vmem>>, %arg2: memref<100x256xbf16, #tpu.memory_space<vmem>>, %arg3: memref<1x256xf32, #tpu.memory_space<vmem>>, %arg4: memref<1x256xf32, #tpu.memory_space<vmem>>, %arg5: memref<1x256xf32, #tpu.memory_space<vmem>>, %arg6: memref<256x784xbf16, #tpu.memory_space<vmem>>, %arg7: memref<1x784xf32, #tpu.memory_space<vmem>>, %arg8: memref<8x784xf32, #tpu.memory_space<vmem>>) attributes {dimension_semantics = [#tpu.dimension_semantics<parallel>], iteration_bounds = array<i64: 1>, scalar_prefetch = 0 : i64, scratch_operands = 0 : i64, tpu.core_type = #tpu.core_type<tc>, window_params = [{transform_indices = @transform_0, window_bounds = array<i64: 8, 100>}, {pipeline_mode = #tpu.pipeline_mode<synchronous>, transform_indices = @transform_1, window_bounds = array<i64: 100, 256>}, {pipeline_mode = #tpu.pipeline_mode<synchronous>, transform_indices = @transform_2, window_bounds = array<i64: 1, 256>}, {pipeline_mode = #tpu.pipeline_mode<synchronous>, transform_indices = @transform_3, window_bounds = array<i64: 1, 256>}, {pipeline_mode = #tpu.pipeline_mode<synchronous>, transform_indices = @transform_4, window_bounds = array<i64: 1, 256>}, {pipeline_mode = #tpu.pipeline_mode<synchronous>, transform_indices = @transform_5, window_bounds = array<i64: 256, 784>}, {pipeline_mode = #tpu.pipeline_mode<synchronous>, transform_indices = @transform_6, window_bounds = array<i64: 1, 784>}, {transform_indices = @transform_7, window_bounds = array<i64: 8, 784>}]} {
    %c0 = arith.constant 0 : index
    %c0_0 = arith.constant 0 : index
    %0 = vector.load %arg1[%c0, %c0_0] : memref<8x100xf32, #tpu.memory_space<vmem>>, vector<8x100xf32>
    %1 = arith.truncf %0 : vector<8x100xf32> to vector<8x100xbf16>
    %c0_1 = arith.constant 0 : index
    %c0_2 = arith.constant 0 : index
    %2 = vector.load %arg2[%c0_1, %c0_2] : memref<100x256xbf16, #tpu.memory_space<vmem>>, vector<100x256xbf16>
    %cst = arith.constant dense<0.000000e+00> : vector<8x256xf32>
    %3 = tpu.matmul %1, %2, %cst {dimension_numbers = #tpu.dot_dimension_numbers<[1], [0], [0], [1], [0, 0, 1, 1], [], []>} : vector<8x100xbf16>, vector<100x256xbf16>, vector<8x256xf32> -> vector<8x256xf32>
    %c0_3 = arith.constant 0 : index
    %c0_4 = arith.constant 0 : index
    %4 = vector.load %arg3[%c0_3, %c0_4] : memref<1x256xf32, #tpu.memory_space<vmem>>, vector<1x256xf32>
    %5 = vector.broadcast %4 : vector<1x256xf32> to vector<8x256xf32>
    %6 = arith.addf %3, %5 : vector<8x256xf32>
    %cst_5 = arith.constant 0.000000e+00 : f32
    %7 = vector.broadcast %cst_5 : f32 to vector<8x256xf32>
    %8 = arith.cmpf oge, %6, %7 : vector<8x256xf32>
    %cst_6 = arith.constant 2.000000e-02 : f32
    %9 = vector.broadcast %cst_6 : f32 to vector<8x256xf32>
    %10 = arith.mulf %9, %6 : vector<8x256xf32>
    %11 = arith.select %8, %6, %10 : vector<8x256xi1>, vector<8x256xf32>
    %cst_7 = arith.constant dense<0.000000e+00> : vector<8xf32>
    %12 = vector.multi_reduction <add>, %11, %cst_7 [1] : vector<8x256xf32> to vector<8xf32>
    %13 = vector.shape_cast %12 : vector<8xf32> to vector<8x1xf32>
    %cst_8 = arith.constant 5.000000e-03 : f32
    %14 = vector.broadcast %cst_8 : f32 to vector<8x1xf32>
    %15 = arith.mulf %13, %14 : vector<8x1xf32>
    %16 = arith.mulf %11, %11 : vector<8x256xf32>
    %cst_9 = arith.constant dense<0.000000e+00> : vector<8xf32>
    %17 = vector.multi_reduction <add>, %16, %cst_9 [1] : vector<8x256xf32> to vector<8xf32>
    %18 = vector.shape_cast %17 : vector<8xf32> to vector<8x1xf32>
    %cst_10 = arith.constant 5.000000e-03 : f32
    %19 = vector.broadcast %cst_10 : f32 to vector<8x1xf32>
    %20 = arith.mulf %18, %19 : vector<8x1xf32>
    %21 = arith.mulf %15, %15 : vector<8x1xf32>
    %22 = arith.subf %20, %21 : vector<8x1xf32>
    %cst_11 = arith.constant 9.99999974E-6 : f32
    %23 = vector.broadcast %cst_11 : f32 to vector<8x1xf32>
    %24 = arith.addf %22, %23 : vector<8x1xf32>
    %25 = math.rsqrt %24 : vector<8x1xf32>
    %26 = vector.broadcast %15 : vector<8x1xf32> to vector<8x256xf32>
    %27 = arith.subf %11, %26 : vector<8x256xf32>
    %28 = vector.broadcast %25 : vector<8x1xf32> to vector<8x256xf32>
    %29 = arith.mulf %27, %28 : vector<8x256xf32>
    %c0_12 = arith.constant 0 : index
    %c0_13 = arith.constant 0 : index
    %30 = vector.load %arg4[%c0_12, %c0_13] : memref<1x256xf32, #tpu.memory_space<vmem>>, vector<1x256xf32>
    %31 = vector.broadcast %30 : vector<1x256xf32> to vector<8x256xf32>
    %32 = arith.mulf %29, %31 : vector<8x256xf32>
    %c0_14 = arith.constant 0 : index
    %c0_15 = arith.constant 0 : index
    %33 = vector.load %arg5[%c0_14, %c0_15] : memref<1x256xf32, #tpu.memory_space<vmem>>, vector<1x256xf32>
    %34 = vector.broadcast %33 : vector<1x256xf32> to vector<8x256xf32>
    %35 = arith.addf %32, %34 : vector<8x256xf32>
    %36 = arith.truncf %35 : vector<8x256xf32> to vector<8x256xbf16>
    %c0_16 = arith.constant 0 : index
    %c0_17 = arith.constant 0 : index
    %37 = vector.load %arg6[%c0_16, %c0_17] : memref<256x784xbf16, #tpu.memory_space<vmem>>, vector<256x784xbf16>
    %cst_18 = arith.constant dense<0.000000e+00> : vector<8x784xf32>
    %38 = tpu.matmul %36, %37, %cst_18 {dimension_numbers = #tpu.dot_dimension_numbers<[1], [0], [0], [1], [0, 0, 1, 1], [], []>} : vector<8x256xbf16>, vector<256x784xbf16>, vector<8x784xf32> -> vector<8x784xf32>
    %c0_19 = arith.constant 0 : index
    %c0_20 = arith.constant 0 : index
    %39 = vector.load %arg7[%c0_19, %c0_20] : memref<1x784xf32, #tpu.memory_space<vmem>>, vector<1x784xf32>
    %40 = vector.broadcast %39 : vector<1x784xf32> to vector<8x784xf32>
    %41 = arith.addf %38, %40 : vector<8x784xf32>
    %42 = arith.negf %41 : vector<8x784xf32>
    %43 = math.exp %42 : vector<8x784xf32>
    %cst_21 = arith.constant 1.000000e+00 : f32
    %44 = vector.broadcast %cst_21 : f32 to vector<8x784xf32>
    %45 = arith.addf %44, %43 : vector<8x784xf32>
    %46 = arith.divf %44, %45 : vector<8x784xf32>
    %c0_22 = arith.constant 0 : index
    %c0_23 = arith.constant 0 : index
    %47 = vector.load %arg8[%c0_22, %c0_23] : memref<8x784xf32, #tpu.memory_space<vmem>>, vector<8x784xf32>
    tpu.vector_store %arg8[%c0_22, %c0_23], %46 {strides = array<i32>} : memref<8x784xf32, #tpu.memory_space<vmem>>, vector<8x784xf32>,
    return
  }
  func.func @transform_0(%arg0: i32) -> (i32, i32) {
    %c0_i32 = arith.constant 0 : i32
    %c0_i32_0 = arith.constant 0 : i32
    return %arg0, %c0_i32 : i32, i32
  }
  func.func @transform_1(%arg0: i32) -> (i32, i32) {
    %c0_i32 = arith.constant 0 : i32
    %c0_i32_0 = arith.constant 0 : i32
    %c0_i32_1 = arith.constant 0 : i32
    return %c0_i32, %c0_i32_0 : i32, i32
  }
  func.func @transform_2(%arg0: i32) -> (i32, i32) {
    %c0_i32 = arith.constant 0 : i32
    %c0_i32_0 = arith.constant 0 : i32
    %c0_i32_1 = arith.constant 0 : i32
    return %c0_i32, %c0_i32_0 : i32, i32
  }
  func.func @transform_3(%arg0: i32) -> (i32, i32) {
    %c0_i32 = arith.constant 0 : i32
    %c0_i32_0 = arith.constant 0 : i32
    %c0_i32_1 = arith.constant 0 : i32
    return %c0_i32, %c0_i32_0 : i32, i32
  }
  func.func @transform_4(%arg0: i32) -> (i32, i32) {
    %c0_i32 = arith.constant 0 : i32
    %c0_i32_0 = arith.constant 0 : i32
    %c0_i32_1 = arith.constant 0 : i32
    return %c0_i32, %c0_i32_0 : i32, i32
  }
  func.func @transform_5(%arg0: i32) -> (i32, i32) {
    %c0_i32 = arith.constant 0 : i32
    %c0_i32_0 = arith.constant 0 : i32
    %c0_i32_1 = arith.constant 0 : i32
    return %c0_i32, %c0_i32_0 : i32, i32
  }
  func.func @transform_6(%arg0: i32) -> (i32, i32) {
    %c0_i32 = arith.constant 0 : i32
    %c0_i32_0 = arith.constant 0 : i32
    %c0_i32_1 = arith.constant 0 : i32
    return %c0_i32, %c0_i32_0 : i32, i32
  }
  func.func @transform_7(%arg0: i32) -> (i32, i32) {
    %c0_i32 = arith.constant 0 : i32
    %c0_i32_0 = arith.constant 0 : i32
    return %arg0, %c0_i32 : i32, i32
  }
}

</mosaic_0001>

<bundles_post_ra>
// kernel: tpu_custom_call.1
= control target key start
LH: loop header
LB: loop body
LE: loop exit
PB: predicated region body
PF: predicated region fallthrough
CT: control target
= control target key end

     0   :  { %vm124_vm0 = vcmask 1041408   ;;  %v1585_v4 = vmov 0   ;;  %vm120_vm1 = vcmask 818176   ;;  %s2059_s0 = inlined_call_operand.vmem [shape: f32[8,100], index: 0, kind: input, shape index: {}]   ;;  %s2060_s1 = inlined_call_operand.vmem [shape: bf16[100,256], index: 1, kind: input, shape index: {}]   ;;  %s2061_s2 = inlined_call_operand.vmem [shape: f32[1,256], index: 2, kind: input, shape index: {}]   ;;  %s2062_s3 = inlined_call_operand.vmem [shape: f32[1,256], index: 3, kind: input, shape index: {}]   ;;  %s2063_s4 = inlined_call_operand.vmem [shape: f32[1,256], index: 4, kind: input, shape index: {}]   ;;  %s2064_s5 = inlined_call_operand.vmem [shape: bf16[256,784], index: 5, kind: input, shape index: {}]   ;;  %s2065_s6 = inlined_call_operand.vmem [shape: f32[1,784], index: 6, kind: input, shape index: {}]   ;;  %s2066_s7 = inlined_call_operand.hbm [shape: f32[8,784], index: 7, kind: output, shape index: {}]  }
   0x1   :  { %v42_v0 = vld [vmem:[%s2060_s1 + $0x60] sm:$0x33]  ;;  %v1355_v3 = vld [vmem:[%s2060_s1 + $0x54] ss:$8 sps:$4 sm:$0xff]   ;;  %163 = vmatprep.mubr.bf16.mxu0 %v1585_v4  ;;  %v1357_v6 = vld [vmem:[%s2060_s1 + $0x50] ss:$8 sps:$4 sm:$0xff]  }
   0x2   :  { %v1207_v1 = vcombine.high %v42_v0, %v42_v0  ;;  %v1206_v2 = vcombine.low %v42_v0, %v42_v0  ;;  %v1358_v7 = vld [vmem:[%s2060_s1 + $0x44] ss:$8 sps:$4 sm:$0xff]   ;;  %v1360_v8 = vld [vmem:[%s2060_s1 + $0x40] ss:$8 sps:$4 sm:$0xff]   ;;  %v1361_v9 = vld [vmem:[%s2060_s1 + $0x34] ss:$8 sps:$4 sm:$0xff]  }
   0x3   :  { %v1363_v10 = vld [vmem:[%s2060_s1 + $0x30] ss:$8 sps:$4 sm:$0xff]   ;;  %v1364_v11 = vld [vmem:[%s2060_s1 + $0x24] ss:$8 sps:$4 sm:$0xff]   ;;  %v1366_v12 = vld [vmem:[%s2060_s1 + $0x20] ss:$8 sps:$4 sm:$0xff]  }
   0x4   :  { %1208 = vmatprep.subr.msk.bf16.mxu0 %vm124_vm0, %v1207_v1  ;;  %v126_v5 = vsel %vm124_vm0, %v1206_v2, 0  ;;  %v1367_v13 = vld [vmem:[%s2060_s1 + $0x14] ss:$8 sps:$4 sm:$0xff]   ;;  %v1369_v14 = vld [vmem:[%s2060_s1 + $0x10] ss:$8 sps:$4 sm:$0xff]   ;;  %v28_v17 = vld [vmem:[%s2059_s0] sm:$0xff] }
   0x5   :  { %134 = vmatpush1.bf16.msra.mxu0 %v126_v5  ;;  %v1370_v15 = vld [vmem:[%s2060_s1 + $0x4] ss:$8 sps:$4 sm:$0xff]   ;;  %v1372_v16 = vld [vmem:[%s2060_s1] ss:$8 sps:$4 sm:$0xff]   ;;  %v29_v18 = vpack.c.bf16 %v28_v17, %v28_v17 }
   0x6   :  { %135 = vmatprep.subr.bf16.mxu0 %v1355_v3 }
   0x9   :  { %136 = vmatpush1.bf16.msra.mxu0 %v1357_v6 }
   0xa   :  { %137 = vmatprep.subr.bf16.mxu0 %v1358_v7 }
   0xd   :  { %138 = vmatpush1.bf16.msra.mxu0 %v1360_v8 }
   0xe   :  { %139 = vmatprep.subr.bf16.mxu0 %v1361_v9 }
  0x11   :  { %140 = vmatpush1.bf16.msra.mxu0 %v1363_v10 }
  0x12   :  { %141 = vmatprep.subr.bf16.mxu0 %v1364_v11 }
  0x15   :  { %142 = vmatpush1.bf16.msra.mxu0 %v1366_v12 }
  0x16   :  { %143 = vmatprep.subr.bf16.mxu0 %v1367_v13 }
  0x19   :  { %144 = vmatpush1.bf16.msra.mxu0 %v1369_v14 }
  0x1a   :  { %145 = vmatprep.subr.bf16.mxu0 %v1370_v15 }
  0x1d   :  { %146 = vmatpush1.bf16.msra.mxu0 %v1372_v16 }
  0x20   :  { %1209 = vmatmul.mubr.msk.bf16.vlgmr.msra.gmra.mxu0 %vm120_vm1, %v29_v18 }
  0x21   :  { %12 = vsyncpa [#allocation3], 0  ;;  %v1373_v19 = vld [vmem:[%s2064_s5 + $0x18c] ss:$28 sps:$4 sm:$0xff]   ;;  %v1377_v21 = vld [vmem:[%s2064_s5 + $0x194] ss:$28 sps:$4 sm:$0xff]   ;;  %v45_v51 = vlaneseq }
  0x22   :  { %v1375_v20 = vld [vmem:[%s2064_s5 + $0x190] ss:$28 sps:$4 sm:$0xff]   ;;  %v1378_v22 = vld [vmem:[%s2064_s5 + $0x188] ss:$28 sps:$4 sm:$0xff]   ;;  %967 = vmatprep.subr.bf16.mxu1 %v1373_v19  ;;  %1008 = vmatprep.subr.bf16.mxu0 %v1377_v21  ;;  %v1383_v24 = vld [vmem:[%s2064_s5 + $0x15c] ss:$28 sps:$4 sm:$0xff]  }
  0x23   :  { %v1379_v23 = vld [vmem:[%s2064_s5 + $0x154] ss:$28 sps:$4 sm:$0xff]   ;;  %968 = vmatpush1.bf16.msra.mxu1 %v1378_v22  ;;  %1009 = vmatpush1.bf16.msra.mxu0 %v1375_v20  ;;  %v1385_v27 = vld [vmem:[%s2064_s5 + $0x11c] ss:$28 sps:$4 sm:$0xff]   ;;  %v1389_v28 = vld [vmem:[%s2064_s5 + $0x124] ss:$28 sps:$4 sm:$0xff]  }
  0x24   :  { %v1381_v25 = vld [vmem:[%s2064_s5 + $0x158] ss:$28 sps:$4 sm:$0xff]   ;;  %v1384_v26 = vld [vmem:[%s2064_s5 + $0x150] ss:$28 sps:$4 sm:$0xff]   ;;  %969 = vmatprep.subr.bf16.mxu1 %v1379_v23  ;;  %1010 = vmatprep.subr.bf16.mxu0 %v1383_v24  ;;  %v1387_v29 = vld [vmem:[%s2064_s5 + $0x120] ss:$28 sps:$4 sm:$0xff]  }
  0x25   :  { %v1390_v30 = vld [vmem:[%s2064_s5 + $0x118] ss:$28 sps:$4 sm:$0xff]   ;;  %v1391_v31 = vld [vmem:[%s2064_s5 + $0xe4] ss:$28 sps:$4 sm:$0xff]   ;;  %v1395_v32 = vld [vmem:[%s2064_s5 + $0xec] ss:$28 sps:$4 sm:$0xff]  }
  0x26   :  { %v1393_v33 = vld [vmem:[%s2064_s5 + $0xe8] ss:$28 sps:$4 sm:$0xff]   ;;  %v1396_v34 = vld [vmem:[%s2064_s5 + $0xe0] ss:$28 sps:$4 sm:$0xff]   ;;  %v1401_v36 = vld [vmem:[%s2064_s5 + $0xb4] ss:$28 sps:$4 sm:$0xff]  }
  0x27   :  { %970 = vmatpush1.bf16.msra.mxu1 %v1384_v26  ;;  %1011 = vmatpush1.bf16.msra.mxu0 %v1381_v25  ;;  %v1397_v35 = vld [vmem:[%s2064_s5 + $0xac] ss:$28 sps:$4 sm:$0xff]   ;;  %v1403_v39 = vld [vmem:[%s2064_s5 + $0x74] ss:$28 sps:$4 sm:$0xff]   ;;  %v1407_v40 = vld [vmem:[%s2064_s5 + $0x7c] ss:$28 sps:$4 sm:$0xff]  }
  0x28   :  { %971 = vmatprep.subr.bf16.mxu1 %v1385_v27  ;;  %1012 = vmatprep.subr.bf16.mxu0 %v1389_v28  ;;  %v1399_v37 = vld [vmem:[%s2064_s5 + $0xb0] ss:$28 sps:$4 sm:$0xff]   ;;  %v1402_v38 = vld [vmem:[%s2064_s5 + $0xa8] ss:$28 sps:$4 sm:$0xff]   ;;  %v1405_v41 = vld [vmem:[%s2064_s5 + $0x78] ss:$28 sps:$4 sm:$0xff]  }
  0x29   :  { %v1408_v42 = vld [vmem:[%s2064_s5 + $0x70] ss:$28 sps:$4 sm:$0xff]   ;;  %v1409_v43 = vld [vmem:[%s2064_s5 + $0x3c] ss:$28 sps:$4 sm:$0xff]   ;;  %v1413_v44 = vld [vmem:[%s2064_s5 + $0x44] ss:$28 sps:$4 sm:$0xff]  }
  0x2a   :  { %v1411_v45 = vld [vmem:[%s2064_s5 + $0x40] ss:$28 sps:$4 sm:$0xff]   ;;  %v1414_v46 = vld [vmem:[%s2064_s5 + $0x38] ss:$28 sps:$4 sm:$0xff]   ;;  %v1419_v48 = vld [vmem:[%s2064_s5 + $0xc] ss:$28 sps:$4 sm:$0xff]  }
  0x2b   :  { %972 = vmatpush1.bf16.msra.mxu1 %v1390_v30  ;;  %1013 = vmatpush1.bf16.msra.mxu0 %v1387_v29  ;;  %v1415_v47 = vld [vmem:[%s2064_s5 + $0x4] ss:$28 sps:$4 sm:$0xff]   ;;  %v1765_v52 = vshrl.u32 %v45_v51, 7  ;;  %v1421_v8 = vld [vmem:[%s2064_s5 + $0x34c] ss:$28 sps:$4 sm:$0xff]   ;;  %vm1178_vm4 = vcmask 130048  }
  0x2c   :  { %973 = vmatprep.subr.bf16.mxu1 %v1391_v31  ;;  %1014 = vmatprep.subr.bf16.mxu0 %v1395_v32  ;;  %v1417_v49 = vld [vmem:[%s2064_s5 + $0x8] ss:$28 sps:$4 sm:$0xff]   ;;  %v1420_v50 = vld [vmem:[%s2064_s5] ss:$28 sps:$4 sm:$0xff]   ;;  %v1425_v9 = vld [vmem:[%s2064_s5 + $0x354] ss:$28 sps:$4 sm:$0xff]  }
  0x2d   :  { %v1768_v53 = vsub.s32 0, %v1765_v52  ;;  %v43_v54 = vld [vmem:[%s2061_s2] sm:$0x3]  ;;  %v1774_v55 = vsub.s32 1, %v1765_v52  ;;  %v1423_v10 = vld [vmem:[%s2064_s5 + $0x350] ss:$28 sps:$4 sm:$0xff]  }
  0x2e   :  { %v1426_v11 = vld [vmem:[%s2064_s5 + $0x348] ss:$28 sps:$4 sm:$0xff]   ;;  %v1427_v12 = vld [vmem:[%s2064_s5 + $0x314] ss:$28 sps:$4 sm:$0xff]   ;;  %v1431_v13 = vld [vmem:[%s2064_s5 + $0x31c] ss:$28 sps:$4 sm:$0xff]  }
  0x2f   :  { %974 = vmatpush1.bf16.msra.mxu1 %v1396_v34  ;;  %1015 = vmatpush1.bf16.msra.mxu0 %v1393_v33  ;;  %v48_v56 = vrot.slane %v43_v54, %v1768_v53  ;;  %v52_v57 = vrot.slane %v43_v54, %v1774_v55  ;;  %v1429_v14 = vld [vmem:[%s2064_s5 + $0x318] ss:$28 sps:$4 sm:$0xff]   ;;  %v1432_v15 = vld [vmem:[%s2064_s5 + $0x310] ss:$28 sps:$4 sm:$0xff]   ;;  %v1437_v17 = vld [vmem:[%s2064_s5 + $0x2e4] ss:$28 sps:$4 sm:$0xff]  }
  0x30   :  { %975 = vmatprep.subr.bf16.mxu1 %v1397_v35  ;;  %1016 = vmatprep.subr.bf16.mxu0 %v1401_v36  ;;  %v1433_v16 = vld [vmem:[%s2064_s5 + $0x2dc] ss:$28 sps:$4 sm:$0xff]   ;;  %v1439_v20 = vld [vmem:[%s2064_s5 + $0x2a4] ss:$28 sps:$4 sm:$0xff]   ;;  %v1443_v22 = vld [vmem:[%s2064_s5 + $0x2ac] ss:$28 sps:$4 sm:$0xff]  }
  0x31   :  { %v1435_v18 = vld [vmem:[%s2064_s5 + $0x2e0] ss:$28 sps:$4 sm:$0xff]   ;;  %v1438_v19 = vld [vmem:[%s2064_s5 + $0x2d8] ss:$28 sps:$4 sm:$0xff]   ;;  %v1441_v21 = vld [vmem:[%s2064_s5 + $0x2a8] ss:$28 sps:$4 sm:$0xff]  }
  0x32   :  { %v1444_v23 = vld [vmem:[%s2064_s5 + $0x2a0] ss:$28 sps:$4 sm:$0xff]   ;;  %v1445_v24 = vld [vmem:[%s2064_s5 + $0x26c] ss:$28 sps:$4 sm:$0xff]   ;;  %v1449_v25 = vld [vmem:[%s2064_s5 + $0x274] ss:$28 sps:$4 sm:$0xff]  }
  0x33   :  { %976 = vmatpush1.bf16.msra.mxu1 %v1402_v38  ;;  %1017 = vmatpush1.bf16.msra.mxu0 %v1399_v37  ;;  %v1447_v26 = vld [vmem:[%s2064_s5 + $0x270] ss:$28 sps:$4 sm:$0xff]   ;;  %v1450_v27 = vld [vmem:[%s2064_s5 + $0x268] ss:$28 sps:$4 sm:$0xff]   ;;  %v1455_v29 = vld [vmem:[%s2064_s5 + $0x23c] ss:$28 sps:$4 sm:$0xff]  }
  0x34   :  { %977 = vmatprep.subr.bf16.mxu1 %v1403_v39  ;;  %1018 = vmatprep.subr.bf16.mxu0 %v1407_v40  ;;  %v1451_v28 = vld [vmem:[%s2064_s5 + $0x234] ss:$28 sps:$4 sm:$0xff]   ;;  %v1457_v32 = vld [vmem:[%s2064_s5 + $0x1fc] ss:$28 sps:$4 sm:$0xff]   ;;  %v1461_v33 = vld [vmem:[%s2064_s5 + $0x204] ss:$28 sps:$4 sm:$0xff]  }
  0x35   :  { %v1453_v30 = vld [vmem:[%s2064_s5 + $0x238] ss:$28 sps:$4 sm:$0xff]   ;;  %v1456_v31 = vld [vmem:[%s2064_s5 + $0x230] ss:$28 sps:$4 sm:$0xff]   ;;  %v1459_v34 = vld [vmem:[%s2064_s5 + $0x200] ss:$28 sps:$4 sm:$0xff]  }
  0x36   :  { %v1462_v35 = vld [vmem:[%s2064_s5 + $0x1f8] ss:$28 sps:$4 sm:$0xff]   ;;  %v1463_v36 = vld [vmem:[%s2064_s5 + $0x1c4] ss:$28 sps:$4 sm:$0xff]   ;;  %v1467_v37 = vld [vmem:[%s2064_s5 + $0x1cc] ss:$28 sps:$4 sm:$0xff]  }
  0x37   :  { %978 = vmatpush1.bf16.msra.mxu1 %v1408_v42  ;;  %1019 = vmatpush1.bf16.msra.mxu0 %v1405_v41  ;;  %v1465_v38 = vld [vmem:[%s2064_s5 + $0x1c8] ss:$28 sps:$4 sm:$0xff]   ;;  %v1468_v39 = vld [vmem:[%s2064_s5 + $0x1c0] ss:$28 sps:$4 sm:$0xff]  }
  0x38   :  { %979 = vmatprep.subr.bf16.mxu1 %v1409_v43  ;;  %1020 = vmatprep.subr.bf16.mxu0 %v1413_v44  ;;  %v1471_v40 = vld [vmem:[%s2064_s5 + $0x19c] ss:$28 sps:$4 sm:$0xff]  }
  0x39   :  { %v1472_v41 = vld [vmem:[%s2064_s5 + $0x360] ss:$28 sps:$4 sm:$0xff]  }
  0x3b   :  { %980 = vmatpush1.bf16.msra.mxu1 %v1414_v46  ;;  %1021 = vmatpush1.bf16.msra.mxu0 %v1411_v45 }
  0x3c   :  { %981 = vmatprep.subr.bf16.mxu1 %v1415_v47  ;;  %1022 = vmatprep.subr.bf16.mxu0 %v1419_v48 }
  0x3f   :  { %982 = vmatpush1.bf16.msra.mxu1 %v1420_v50  ;;  %1023 = vmatpush1.bf16.msra.mxu0 %v1417_v49  ;;  %v196_v49 = vld [vmem:[%s2062_s3] sm:$0x3] }
  0x40   :  { %983 = vmatprep.subr.bf16.mxu1 %v1421_v8  ;;  %1024 = vmatprep.subr.bf16.mxu0 %v1425_v9  ;;  %v210_v50 = vld [vmem:[%s2063_s4] sm:$0x3]  ;;  %v1477_v8 = vld [vmem:[%s2064_s5 + $0x328] ss:$28 sps:$4 sm:$0xff]  }
  0x41   :  { %v1474_v9 = vld [vmem:[%s2064_s5 + $0x160] ss:$28 sps:$4 sm:$0xff]  }
  0x43   :  { %984 = vmatpush2.bf16.msra.mxu1 %v1426_v11  ;;  %1025 = vmatpush2.bf16.msra.mxu0 %v1423_v10  ;;  %v1478_v10 = vld [vmem:[%s2064_s5 + $0x168] ss:$28 sps:$4 sm:$0xff]  }
  0x44   :  { %985 = vmatprep.subr.bf16.mxu1 %v1427_v12  ;;  %1026 = vmatprep.subr.bf16.mxu0 %v1431_v13  ;;  %v1481_v11 = vld [vmem:[%s2064_s5 + $0x12c] ss:$28 sps:$4 sm:$0xff]  }
  0x45   :  { %v1482_v12 = vld [vmem:[%s2064_s5 + $0x2f0] ss:$28 sps:$4 sm:$0xff]   ;;  %v1479_v13 = vld [vmem:[%s2064_s5 + $0x128] ss:$28 sps:$4 sm:$0xff]  }
  0x47   :  { %986 = vmatpush2.bf16.msra.mxu1 %v1432_v15  ;;  %1027 = vmatpush2.bf16.msra.mxu0 %v1429_v14  ;;  %v1483_v14 = vld [vmem:[%s2064_s5 + $0x130] ss:$28 sps:$4 sm:$0xff]  }
  0x48   :  { %987 = vmatprep.subr.bf16.mxu1 %v1433_v16  ;;  %1028 = vmatprep.subr.bf16.mxu0 %v1437_v17  ;;  %v1486_v15 = vld [vmem:[%s2064_s5 + $0xf4] ss:$28 sps:$4 sm:$0xff]  }
  0x49   :  { %v1487_v16 = vld [vmem:[%s2064_s5 + $0x2b8] ss:$28 sps:$4 sm:$0xff]   ;;  %v1484_v17 = vld [vmem:[%s2064_s5 + $0xf0] ss:$28 sps:$4 sm:$0xff]  }
  0x4b   :  { %988 = vmatpush2.bf16.msra.mxu1 %v1438_v19  ;;  %1029 = vmatpush2.bf16.msra.mxu0 %v1435_v18  ;;  %v1488_v18 = vld [vmem:[%s2064_s5 + $0xf8] ss:$28 sps:$4 sm:$0xff]  }
  0x4c   :  { %989 = vmatprep.subr.bf16.mxu1 %v1439_v20  ;;  %1030 = vmatprep.subr.bf16.mxu0 %v1443_v22  ;;  %v1491_v19 = vld [vmem:[%s2064_s5 + $0xbc] ss:$28 sps:$4 sm:$0xff]  }
  0x4d   :  { %v1492_v20 = vld [vmem:[%s2064_s5 + $0x280] ss:$28 sps:$4 sm:$0xff]  }
  0x4e   :  { %v1493_v22 = vld [vmem:[%s2064_s5 + $0xc0] ss:$28 sps:$4 sm:$0xff]  }
  0x4f   :  { %990 = vmatpush2.bf16.msra.mxu1 %v1444_v23  ;;  %1031 = vmatpush2.bf16.msra.mxu0 %v1441_v21  ;;  %v1489_v21 = vld [vmem:[%s2064_s5 + $0xb8] ss:$28 sps:$4 sm:$0xff]   ;;  %v1496_v23 = vld [vmem:[%s2064_s5 + $0x84] ss:$28 sps:$4 sm:$0xff]  }
  0x50   :  { %991 = vmatprep.subr.bf16.mxu1 %v1445_v24  ;;  %1032 = vmatprep.subr.bf16.mxu0 %v1449_v25  ;;  %v1497_v24 = vld [vmem:[%s2064_s5 + $0x248] ss:$28 sps:$4 sm:$0xff]   ;;  %v1494_v25 = vld [vmem:[%s2064_s5 + $0x80] ss:$28 sps:$4 sm:$0xff]  }
  0x53   :  { %992 = vmatpush2.bf16.msra.mxu1 %v1450_v27  ;;  %1033 = vmatpush2.bf16.msra.mxu0 %v1447_v26  ;;  %v1498_v26 = vld [vmem:[%s2064_s5 + $0x88] ss:$28 sps:$4 sm:$0xff]  }
  0x54   :  { %993 = vmatprep.subr.bf16.mxu1 %v1451_v28  ;;  %1034 = vmatprep.subr.bf16.mxu0 %v1455_v29  ;;  %v1501_v27 = vld [vmem:[%s2064_s5 + $0x4c] ss:$28 sps:$4 sm:$0xff]  }
  0x55   :  { %v1502_v28 = vld [vmem:[%s2064_s5 + $0x210] ss:$28 sps:$4 sm:$0xff]   ;;  %v1499_v29 = vld [vmem:[%s2064_s5 + $0x48] ss:$28 sps:$4 sm:$0xff]  }
  0x57   :  { %994 = vmatpush2.bf16.msra.mxu1 %v1456_v31  ;;  %1035 = vmatpush2.bf16.msra.mxu0 %v1453_v30  ;;  %v1503_v30 = vld [vmem:[%s2064_s5 + $0x50] ss:$28 sps:$4 sm:$0xff]  }
  0x58   :  { %995 = vmatprep.subr.bf16.mxu1 %v1457_v32  ;;  %1036 = vmatprep.subr.bf16.mxu0 %v1461_v33  ;;  %v1506_v31 = vld [vmem:[%s2064_s5 + $0x14] ss:$28 sps:$4 sm:$0xff]  }
  0x59   :  { %v1507_v32 = vld [vmem:[%s2064_s5 + $0x1d8] ss:$28 sps:$4 sm:$0xff]   ;;  %v1504_v33 = vld [vmem:[%s2064_s5 + $0x10] ss:$28 sps:$4 sm:$0xff]  }
  0x5b   :  { %996 = vmatpush2.bf16.msra.mxu1 %v1462_v35  ;;  %1037 = vmatpush2.bf16.msra.mxu0 %v1459_v34  ;;  %v1508_v34 = vld [vmem:[%s2064_s5 + $0x18] ss:$28 sps:$4 sm:$0xff]  }
  0x5c   :  { %997 = vmatprep.subr.bf16.mxu1 %v1463_v36  ;;  %1038 = vmatprep.subr.bf16.mxu0 %v1467_v37  ;;  %v1511_v35 = vld [vmem:[%s2064_s5 + $0x35c] ss:$28 sps:$4 sm:$0xff]   ;;  %v1514_v37 = vld [vmem:[%s2064_s5 + $0x324] ss:$28 sps:$4 sm:$0xff]  }
  0x5d   :  { %v1509_v36 = vld [vmem:[%s2064_s5 + $0x358] ss:$28 sps:$4 sm:$0xff]  }
  0x5f   :  { %998 = vmatpush2.bf16.msra.mxu1 %v1468_v39  ;;  %1039 = vmatpush2.bf16.msra.mxu0 %v1465_v38  ;;  %v1512_v38 = vld [vmem:[%s2064_s5 + $0x320] ss:$28 sps:$4 sm:$0xff]   ;;  %v1517_v39 = vld [vmem:[%s2064_s5 + $0x2ec] ss:$28 sps:$4 sm:$0xff]  }
  0x60   :  { %1049 = vmatprep.subr.bf16.mxu1 %v1471_v40  ;;  %1329 = vmatprep.subr.bf16.mxu0 %v1472_v41  ;;  %v1515_v40 = vld [vmem:[%s2064_s5 + $0x2e8] ss:$28 sps:$4 sm:$0xff]   ;;  %v1520_v41 = vld [vmem:[%s2064_s5 + $0x2b4] ss:$28 sps:$4 sm:$0xff]  }
  0xe0   :  { %v165_v58 = vpop.f32.mrf.mxu0 }
  0xe1   :  { %v166_v59 = vadd.f32 %v165_v58, %v48_v56  ;;  %v205_v56 = vrot.slane %v196_v49, %v1774_v55 }
  0xe2   :  { %v167_v60 = vpop.f32.mrf.mxu0 }
  0xe3   :  { %v174_v61 = vmul.f32 0.02, %v166_v59  ;;  %v168_v62 = vadd.f32 %v167_v60, %v52_v57  ;;  %vm172_vm2 = vcmp.ge.f32.partialorder %v166_v59, 0.0  ;;  %v201_v57 = vrot.slane %v196_v49, %v1768_v53  ;;  %v1532_v49 = vld [vmem:[%s2064_s5 + $0x1d4] ss:$28 sps:$4 sm:$0xff]  }
  0xe4   :  { %v169_v63 = vpop.f32.mrf.mxu0  ;;  %v219_v60 = vrot.slane %v210_v50, %v1774_v55 }
  0xe5   :  { %v175_v0 = vmul.f32 0.02, %v168_v62  ;;  %vm173_vm3 = vcmp.ge.f32.partialorder %v168_v62, 0.0  ;;  %v1778_v2 = vsel %vm172_vm2, %v166_v59, %v174_v61 }
  0xe6   :  { %v170_v1 = vpop.f32.mrf.mxu0  ;;  %v182_v6 = vmul.f32 %v1778_v2, %v1778_v2 }
  0xe7   :  { %v1780_v3 = vsel %vm173_vm3, %v168_v62, %v175_v0  ;;  %v215_v62 = vrot.slane %v210_v50, %v1768_v53  ;;  %v1530_v50 = vld [vmem:[%s2064_s5 + $0x1d0] ss:$28 sps:$4 sm:$0xff]  }
  0xe8   :  { %v178_v4 = vadd.f32 %v1780_v3, %v1778_v2  ;;  %v183_v5 = vmul.f32 %v1780_v3, %v1780_v3 }
  0xea   :  { %179 = vadd.xlane.f32.xlu0 %v178_v4  ;;  %v184_v7 = vadd.f32 %v183_v5, %v182_v6  ;;  %v1473_v6 = vld [vmem:[%s2064_s5 + $0x1a0] ss:$28 sps:$4 sm:$0xff]  }
  0xee   :  { %185 = vadd.xlane.f32.xlu0 %v184_v7  ;;  %v1476_v7 = vld [vmem:[%s2064_s5 + $0x164] ss:$28 sps:$4 sm:$0xff]  }
 0x173   :  { %v180_v42 = vpop.xlane.xlu0 %179 }
 0x174   :  { %v181_v43 = vmul.f32 0.005, %v180_v42  ;;  %v1518_v42 = vld [vmem:[%s2064_s5 + $0x2b0] ss:$28 sps:$4 sm:$0xff]  }
 0x176   :  { %v188_v45 = vmul.f32 %v181_v43, %v181_v43  ;;  %v192_v51 = vsub.f32 %v1778_v2, %v181_v43  ;;  %v193_v54 = vsub.f32 %v1780_v3, %v181_v43  ;;  %v1469_v2 = vld [vmem:[%s2064_s5 + $0x198] ss:$28 sps:$4 sm:$0xff]  }
 0x177   :  { %v186_v44 = vpop.xlane.xlu0 %185  ;;  %v1523_v43 = vld [vmem:[%s2064_s5 + $0x27c] ss:$28 sps:$4 sm:$0xff]  }
 0x178   :  { %v187_v46 = vmul.f32 0.005, %v186_v44  ;;  %v1521_v44 = vld [vmem:[%s2064_s5 + $0x278] ss:$28 sps:$4 sm:$0xff]  }
 0x17a   :  { %v189_v47 = vsub.f32 %v187_v46, %v188_v45  ;;  %v1526_v45 = vld [vmem:[%s2064_s5 + $0x244] ss:$28 sps:$4 sm:$0xff]  }
 0x17b   :  { %v1524_v46 = vld [vmem:[%s2064_s5 + $0x240] ss:$28 sps:$4 sm:$0xff]  }
 0x17c   :  { %v190_v48 = vadd.f32 1e-05, %v189_v47  ;;  %v1529_v47 = vld [vmem:[%s2064_s5 + $0x20c] ss:$28 sps:$4 sm:$0xff]  }
 0x17e   :  { %1533 = vrsqrt.f32 %v190_v48  ;;  %v1527_v48 = vld [vmem:[%s2064_s5 + $0x208] ss:$28 sps:$4 sm:$0xff]   ;;  %s1586_s5 = smov [#allocation2]  }
 0x18b   :  { %v1534_v58 = vpop.eup %1533 }
 0x18c   :  { %v195_v59 = vmul.f32 %v1534_v58, %v193_v54  ;;  %v194_v61 = vmul.f32 %v1534_v58, %v192_v51  ;;  %v366_v51 = vsub.s32 2, %v1765_v52  ;;  %v354_v54 = vld [vmem:[%s2065_s6] sm:$0x7f]  ;;  %s1186_s6 = sshll.u32 %s1586_s5, 4  ;;  %s1187_s6 = int_to_ptr.vmem [resolvable:$true] %s1186_s6 }
 0x18d   :  { %s1563_s21 = scalar_lea.vmem %s1187_s6, 896  ;;  %p1568_p1 = scmp.lt.s32.totalorder %s1187_s6, %s1187_s6 }
 0x18e   :  { %v209_v63 = vmul.f32 %v205_v56, %v195_v59  ;;  %v208_v0 = vmul.f32 %v201_v57, %v194_v61  ;;  %v370_v56 = vsub.s32 3, %v1765_v52  ;;  %v359_v57 = vrot.slane %v354_v54, %v1768_v53  ;;  %p1564_p0 = scmp.ne.s32.totalorder %s1187_s6, %s1563_s21  ;;  %p1569_p2 = scmp.lt.s32.totalorder %s1563_s21, %s1563_s21 }
 0x18f   :  { %v367_v58 = vrot.slane %v354_v54, %v366_v51  ;;  %v363_v59 = vrot.slane %v354_v54, %v1774_v55 }
 0x190   :  { %v223_v1 = vadd.f32 %v219_v60, %v209_v63  ;;  %v222_v4 = vadd.f32 %v215_v62, %v208_v0  ;;  %v371_v60 = vrot.slane %v354_v54, %v370_v56  ;;  %p1570_p3 = por %p1569_p2, %p1568_p1 }
 0x192   :  { %v225_v5 = vpack.c.bf16 %v223_v1, %v223_v1  ;;  %v1905_v3 = vpack.c.bf16 %v222_v4, %v222_v4  ;;  %p1571_p4 = pnand %p1570_p3, %p1564_p0 }
 0x194   :  { %999 = vmatprep.mubr.bf16.mxu1 %v225_v5  ;;  %1040 = vmatprep.mubr.bf16.mxu0 %v225_v5 }
 0x195   :  { %1000 = vmatmul.mubr.bf16.vlgmr.msra.gmra.mxu1 %v1905_v3  ;;  %1041 = vmatmul.mubr.bf16.vlgmr.msra.gmra.mxu0 %v1905_v3 }
 0x196   :  { %1050 = vmatpush1.bf16.msra.mxu1 %v1469_v2  ;;  %1330 = vmatpush3.bf16.msra.mxu0 %v1473_v6 }
 0x197   :  { %1081 = vmatprep.mubr.bf16.mxu1 %v225_v5  ;;  %1122 = vmatprep.mubr.bf16.mxu0 %v225_v5 }
 0x198   :  { %1051 = vmatprep.subr.bf16.mxu1 %v1476_v7  ;;  %1331 = vmatprep.subr.bf16.mxu0 %v1477_v8 }
 0x19a   :  { %1052 = vmatpush1.bf16.msra.mxu1 %v1474_v9  ;;  %1332 = vmatpush3.bf16.msra.mxu0 %v1478_v10 }
 0x19b   :  { %1053 = vmatprep.subr.bf16.mxu1 %v1481_v11  ;;  %1333 = vmatprep.subr.bf16.mxu0 %v1482_v12 }
 0x19e   :  { %1054 = vmatpush1.bf16.msra.mxu1 %v1479_v13  ;;  %1334 = vmatpush3.bf16.msra.mxu0 %v1483_v14 }
 0x19f   :  { %1055 = vmatprep.subr.bf16.mxu1 %v1486_v15  ;;  %1335 = vmatprep.subr.bf16.mxu0 %v1487_v16 }
 0x1a2   :  { %1056 = vmatpush1.bf16.msra.mxu1 %v1484_v17  ;;  %1336 = vmatpush3.bf16.msra.mxu0 %v1488_v18 }
 0x1a3   :  { %1057 = vmatprep.subr.bf16.mxu1 %v1491_v19  ;;  %1337 = vmatprep.subr.bf16.mxu0 %v1492_v20  ;;  %v382_v19 = vsub.s32 6, %v1765_v52 }
 0x1a6   :  { %1058 = vmatpush1.bf16.msra.mxu1 %v1489_v21  ;;  %1338 = vmatpush3.bf16.msra.mxu0 %v1493_v22  ;;  %v383_v21 = vrot.slane %v354_v54, %v382_v19 }
 0x1a7   :  { %1059 = vmatprep.subr.bf16.mxu1 %v1496_v23  ;;  %1339 = vmatprep.subr.bf16.mxu0 %v1497_v24 }
 0x1aa   :  { %1060 = vmatpush1.bf16.msra.mxu1 %v1494_v25  ;;  %1340 = vmatpush3.bf16.msra.mxu0 %v1498_v26 }
 0x1ab   :  { %1061 = vmatprep.subr.bf16.mxu1 %v1501_v27  ;;  %1341 = vmatprep.subr.bf16.mxu0 %v1502_v28 }
 0x1ae   :  { %1062 = vmatpush1.bf16.msra.mxu1 %v1499_v29  ;;  %1342 = vmatpush3.bf16.msra.mxu0 %v1503_v30 }
 0x1af   :  { %1063 = vmatprep.subr.bf16.mxu1 %v1506_v31  ;;  %1343 = vmatprep.subr.bf16.mxu0 %v1507_v32 }
 0x1b2   :  { %1064 = vmatpush1.bf16.msra.mxu1 %v1504_v33  ;;  %1344 = vmatpush3.bf16.msra.mxu0 %v1508_v34  ;;  %v374_v34 = vsub.s32 4, %v1765_v52 }
 0x1b3   :  { %1065 = vmatprep.subr.bf16.mxu1 %v1511_v35  ;;  %v378_v35 = vsub.s32 5, %v1765_v52 }
 0x1b5   :  { %1123 = vmatmul.mubr.bf16.vlgmr.msra.gmra.mxu0 %v1905_v3 }
 0x1b6   :  { %1066 = vmatpush2.bf16.msra.mxu1 %v1509_v36  ;;  %v375_v36 = vrot.slane %v354_v54, %v374_v34 }
 0x1b7   :  { %1067 = vmatprep.subr.bf16.mxu1 %v1514_v37  ;;  %v379_v37 = vrot.slane %v354_v54, %v378_v35 }
 0x1ba   :  { %1068 = vmatpush2.bf16.msra.mxu1 %v1512_v38 }
 0x1bb   :  { %1069 = vmatprep.subr.bf16.mxu1 %v1517_v39 }
 0x1be   :  { %1070 = vmatpush2.bf16.msra.mxu1 %v1515_v40 }
 0x1bf   :  { %1071 = vmatprep.subr.bf16.mxu1 %v1520_v41 }
 0x1c2   :  { %1072 = vmatpush2.bf16.msra.mxu1 %v1518_v42 }
 0x1c3   :  { %1073 = vmatprep.subr.bf16.mxu1 %v1523_v43 }
 0x1c6   :  { %1074 = vmatpush2.bf16.msra.mxu1 %v1521_v44 }
 0x1c7   :  { %1075 = vmatprep.subr.bf16.mxu1 %v1526_v45 }
 0x1ca   :  { %1076 = vmatpush2.bf16.msra.mxu1 %v1524_v46 }
 0x1cb   :  { %1077 = vmatprep.subr.bf16.mxu1 %v1529_v47 }
 0x1ce   :  { %1078 = vmatpush2.bf16.msra.mxu1 %v1527_v48 }
 0x1cf   :  { %1079 = vmatprep.subr.bf16.mxu1 %v1532_v49 }
 0x1d2   :  { %1080 = vmatpush2.bf16.msra.mxu1 %v1530_v50 }
 0x1d5   :  { %1082 = vmatmul.mubr.bf16.vlgmr.msra.gmra.mxu1 %v1905_v3 }
 0x255   :  { %v1001_v61 = vpop.f32.mrf.mxu1  ;;  %v1042_v62 = vpop.f32.mrf.mxu0 }
 0x256   :  { %v1002_v63 = vadd.f32 %v1001_v61, %v359_v57  ;;  %v1043_v0 = vadd.f32 %v1042_v62, %v367_v58 }
 0x257   :  { %v1003_v1 = vpop.f32.mrf.mxu1  ;;  %v1044_v4 = vpop.f32.mrf.mxu0 }
 0x258   :  { %v1322_v5 = vmul.f32 -1.442695, %v1002_v63  ;;  %v1324_v2 = vmul.f32 -1.442695, %v1043_v0  ;;  %v1004_v3 = vadd.f32 %v1003_v1, %v363_v59  ;;  %v1045_v6 = vadd.f32 %v1044_v4, %v371_v60 }
 0x259   :  { %v1005_v7 = vpop.f32.mrf.mxu1  ;;  %v1046_v8 = vpop.f32.mrf.mxu0 }
 0x25a   :  { %1535 = vpow2.f32 %v1322_v5  ;;  %v1323_v9 = vmul.f32 -1.442695, %v1004_v3  ;;  %v1325_v10 = vmul.f32 -1.442695, %v1045_v6 }
 0x25b   :  { %1537 = vpow2.f32 %v1324_v2  ;;  %v1006_v53 = vpop.f32.mrf.mxu1  ;;  %v1047_v11 = vpop.f32.mrf.mxu0 }
 0x25c   :  { %1539 = vpow2.f32 %v1323_v9 }
 0x25d   :  { %1541 = vpow2.f32 %v1325_v10 }
 0x267   :  { %v1536_v55 = vpop.eup %1535 }
 0x268   :  { %v1538_v12 = vpop.eup %1537  ;;  %v1151_v13 = vadd.f32 1.0, %v1536_v55 }
 0x269   :  { %v1540_v14 = vpop.eup %1539  ;;  %v1153_v15 = vadd.f32 1.0, %v1538_v12 }
 0x26a   :  { %v1542_v16 = vpop.eup %1541  ;;  %1543 = vrcp.f32 %v1151_v13  ;;  %v1152_v17 = vadd.f32 1.0, %v1540_v14 }
 0x26b   :  { %1545 = vrcp.f32 %v1153_v15  ;;  %v1154_v18 = vadd.f32 1.0, %v1542_v16 }
 0x26c   :  { %1547 = vrcp.f32 %v1152_v17 }
 0x26d   :  { %1549 = vrcp.f32 %v1154_v18 }
 0x275   :  { %v1345_v20 = vpop.f32.mrf.mxu0 }
 0x277   :  { %v1544_v22 = vpop.eup %1543  ;;  %v1346_v23 = vpop.f32.mrf.mxu0 }
 0x278   :  { %v1546_v24 = vpop.eup %1545  ;;  %1172 = vst [vmem:[#allocation2] sm:$0xff] %v1544_v22  ;;  %v1347_v25 = vadd.f32 %v1346_v23, %v1345_v20 }
 0x279   :  { %v1548_v26 = vpop.eup %1547  ;;  %1174 = vst [vmem:[#allocation2 + $0x10] sm:$0xff] %v1546_v24  ;;  %v1348_v27 = vpop.f32.mrf.mxu0 }
 0x27a   :  { %v1550_v28 = vpop.eup %1549  ;;  %1173 = vst [vmem:[#allocation2 + $0x8] sm:$0xff] %v1548_v26  ;;  %v1125_v29 = vadd.f32 %v1347_v25, %v383_v21 }
 0x27b   :  { %1175 = vst [vmem:[#allocation2 + $0x18] sm:$0xff] %v1550_v28  ;;  %v1349_v30 = vpop.f32.mrf.mxu0 }
 0x27c   :  { %v1328_v31 = vmul.f32 -1.442695, %v1125_v29 }
 0x27e   :  { %1551 = vpow2.f32 %v1328_v31 }
 0x28b   :  { %v1552_v32 = vpop.eup %1551 }
 0x28c   :  { %v1157_v33 = vadd.f32 1.0, %v1552_v32 }
 0x28e   :  { %1553 = vrcp.f32 %v1157_v33 }
 0x295   :  { %v1083_v38 = vpop.f32.mrf.mxu1 }
 0x296   :  { %v1084_v39 = vadd.f32 %v1083_v38, %v375_v36 }
 0x297   :  { %v1085_v40 = vpop.f32.mrf.mxu1 }
 0x298   :  { %v1326_v41 = vmul.f32 -1.442695, %v1084_v39  ;;  %v1086_v42 = vadd.f32 %v1085_v40, %v379_v37 }
 0x299   :  { %v1087_v43 = vpop.f32.mrf.mxu1 }
 0x29a   :  { %1555 = vpow2.f32 %v1326_v41  ;;  %v1327_v44 = vmul.f32 -1.442695, %v1086_v42 }
 0x29b   :  { %v1554_v45 = vpop.eup %1553  ;;  %v1088_v46 = vpop.f32.mrf.mxu1 }
 0x29c   :  { %1557 = vpow2.f32 %v1327_v44  ;;  %1179 = vst.msk [vmem:[#allocation2 + $0x30] sm:$0xff] %vm1178_vm4, %v1554_v45 }
 0x2a7   :  { %v1556_v47 = vpop.eup %1555 }
 0x2a8   :  { %v1155_v48 = vadd.f32 1.0, %v1556_v47 }
 0x2a9   :  { %v1558_v49 = vpop.eup %1557 }
 0x2aa   :  { %1559 = vrcp.f32 %v1155_v48  ;;  %v1156_v52 = vadd.f32 1.0, %v1558_v49 }
 0x2ac   :  { %1561 = vrcp.f32 %v1156_v52 }
 0x2b7   :  { %v1560_v50 = vpop.eup %1559 }
 0x2b8   :  { %1176 = vst [vmem:[#allocation2 + $0x20] sm:$0xff] %v1560_v50 }
 0x2b9   :  { %v1562_v51 = vpop.eup %1561 }
 0x2ba   :  { %1177 = vst [vmem:[#allocation2 + $0x28] sm:$0xff] %v1562_v51 }
 0x2bb   :  { %1574 = shalt.err (!%p1571_p4)
}
 0x2bc   :  { %1189 = dma.vmem_to_hbm [thread:$0]  %s1187_s6, 896, %s2066_s7, [#allocation3]  }
 0x2bd   :  { %1583 = dma.done.wait [#allocation3], 896  }
 0x2be   :  { %1584 = vsyncadd [#allocation3], 4294966400 }
 0x2bf   :  { %1193 = vsyncpa [#allocation3], 1 }

</bundles_post_ra>
